<compile_context>
chip_gen: v7x
topology: tpu7x:2x2x1
jax: 0.10.0
libtpu: 0.0.40
codegen_flags: <defaults>
</compile_context>

<pallas_src>
import jax
import jax.numpy as jnp
import numpy as np
from jax.experimental import pallas as pl
from jax.experimental.pallas import tpu as pltpu

SPACE = 32
WS_CODES = (32, 9, 10, 0)   # space, tab, newline, NUL (padding)


def _make_kernel(seq_rules, ws_fold_pats, L):
    """seq_rules: ((pat, rep), ...) applied sequentially via compare+select.
       ws_fold_pats: (pat, ...) folded directly into the whitespace mask."""

    def kernel(chars_ref, norm_ref, start_ref, id_ref):
        x = chars_ref[...].astype(jnp.int32)                    # (TB, L) int32

        # --- 1) sequential single-char substitutions (VPU) -----------------
        for pat, rep in seq_rules:                              # static unroll
            x = jnp.where(x == pat, rep, x)

        # --- 2) whitespace mask; ws-replacement rules folded in ------------
        is_space = (x == WS_CODES[0])
        for c in WS_CODES[1:]:
            is_space = is_space | (x == c)
        for pat in ws_fold_pats:                                # static unroll
            is_space = is_space | (x == pat)
        norm_ref[...] = jnp.where(is_space, SPACE, x).astype(norm_ref.dtype)

        # --- 3) token-start mask (prev char is whitespace, or lane 0) ------
        lane = jax.lax.broadcasted_iota(jnp.int32, x.shape, 1)
        space_i = is_space.astype(jnp.int32)
        prev_space = pltpu.roll(space_i, shift=1, axis=1)       # circular roll;
        token_start = jnp.where(                                # lane==0 guard
            is_space, 0,                                        # handles wrap.
            jnp.where((prev_space == 1) | (lane == 0), 1, 0)).astype(jnp.int32)
        start_ref[...] = token_start.astype(start_ref.dtype)

        # --- 4) per-char token id: inclusive prefix sum along lanes --------
        # log2(L)-step shift-and-add scan, all int32 (exact), no MXU.
        csum = token_start
        shift = 1
        while shift < L:                                        # 7 steps @ L=128
            rolled = pltpu.roll(csum, shift=shift, axis=1)
            csum = csum + jnp.where(lane >= shift, rolled, 0)   # mask wrap-around
            shift *= 2
        id_ref[...] = jnp.where(is_space, -1, csum - 1)

    return kernel


def regex_tokenizer_pallas(line_codes, patterns_list, *, tb=32):
    """line_codes: (B, L) int8 ASCII codes, L a multiple of 128, B a multiple
    of tb.  Returns (norm int8, token_start int8, token_id int32), all (B, L)."""
    B, L = line_codes.shape
    assert L % 128 == 0 and B % tb == 0

    # Classify the (static) rules on the host.  If every replacement is a
    # whitespace char, the rules commute with the whitespace split and can all
    # be folded into the whitespace predicate; otherwise apply all of them
    # sequentially so the original rule ordering is preserved exactly.
    rules = []
    for pat, rep in patterns_list:
        assert len(pat) == 1 and len(rep) == 1, (
            "only single-char -> single-char rules are supported on-device")
        rules.append((ord(pat), ord(rep)))
    if all(chr(rep) in " \t\n" for _, rep in rules):
        seq_rules, ws_fold_pats = (), tuple(pat for pat, _ in rules)
    else:
        seq_rules, ws_fold_pats = tuple(rules), ()

    kernel = _make_kernel(seq_rules, ws_fold_pats, L)
    out_shapes = (
        jax.ShapeDtypeStruct((B, L), jnp.int8),    # normalized chars
        jax.ShapeDtypeStruct((B, L), jnp.int8),    # token-start mask
        jax.ShapeDtypeStruct((B, L), jnp.int32),   # token id per char (-1 = ws)
    )
    spec = pl.BlockSpec((tb, L), lambda i: (i, 0))
    return pl.pallas_call(
        kernel,
        out_shape=out_shapes,
        grid=(B // tb,),
        in_specs=[spec],
        out_specs=(spec, spec, spec),
        compiler_params=pltpu.CompilerParams(
            dimension_semantics=("parallel",)),    # shards across TCs on v7x
    )(line_codes)


def decode_tokens(norm_row, id_row):
    """Host-side glue: rebuild List[str] for one line from kernel outputs."""
    n_tok = int(id_row.max()) + 1 if (id_row >= 0).any() else 0
    toks = ["" for _ in range(n_tok)]
    for c, t in zip(norm_row, id_row):
        if t >= 0:
            toks[int(t)] += chr(int(c))
    return toks


def reference_tokenize(line, patterns_list):
    for pat, rep in patterns_list:
        line = line.replace(pat, rep)
    return line.split()


if __name__ == "__main__":
    # Deterministic "parameters": single-char regex replacement rules.
    patterns_list = [(",", " "), (".", " "), ("!", " "), ("?", " ")]

    # Deterministic batch of lines: fixed prefixes + random suffixes drawn
    # with PRNGKey(0) from a small alphabet (letters, space, punctuation).
    B, L, TB = 64, 128, 32
    base_lines = [
        "Hello, world! This is a basic regex tokenizer test.",
        "Basic Regex Tokenization for a Line of Text",
        "commas, dots. bangs! and? question marks",
        "",
    ]
    alphabet = "abcdefg ,.!? "
    key = jax.random.PRNGKey(0)
    rand_idx = np.asarray(jax.random.randint(key, (B, 24), 0, len(alphabet)))
    lines = []
    for b in range(B):
        suffix = "".join(alphabet[int(i)] for i in rand_idx[b])
        lines.append((base_lines[b % len(base_lines)] + " " + suffix)[:L])

    # Encode to (B, L) int8, pad rows with spaces.
    codes = np.full((B, L), SPACE, dtype=np.int8)
    for b, line in enumerate(lines):
        row = np.frombuffer(line.encode("ascii"), dtype=np.uint8)
        codes[b, :len(line)] = row
    line_codes = jnp.asarray(codes)

    norm, start_mask, token_id = regex_tokenizer_pallas(
        line_codes, patterns_list, tb=TB)
    jax.block_until_ready((norm, start_mask, token_id))

    norm_np = np.asarray(norm)
    id_np = np.asarray(token_id)
    for b in range(B):
        got = decode_tokens(norm_np[b], id_np[b])
        want = reference_tokenize(lines[b], patterns_list)
        assert got == want, f"row {b} mismatch:\n got={got}\n want={want}"
    print("KERNEL_OK")
</pallas_src>

<mosaic_0001>
module attributes {stable_mosaic.version = 11 : i64} {
  func.func @kernel(%arg0: i32, %arg1: memref<32x128xi8, #tpu.memory_space<vmem>>, %arg2: memref<32x128xi8, #tpu.memory_space<vmem>>, %arg3: memref<32x128xi8, #tpu.memory_space<vmem>>, %arg4: memref<32x128xi32, #tpu.memory_space<vmem>>) attributes {dimension_semantics = [#tpu.dimension_semantics<parallel>], iteration_bounds = array<i64: 2>, scalar_prefetch = 0 : i64, scratch_operands = 0 : i64, tpu.core_type = #tpu.core_type<tc>, window_params = [{transform_indices = @transform_0, window_bounds = array<i64: 32, 128>}, {transform_indices = @transform_1, window_bounds = array<i64: 32, 128>}, {transform_indices = @transform_2, window_bounds = array<i64: 32, 128>}, {transform_indices = @transform_3, window_bounds = array<i64: 32, 128>}]} {
    %c0 = arith.constant 0 : index
    %c0_0 = arith.constant 0 : index
    %0 = vector.load %arg1[%c0, %c0_0] : memref<32x128xi8, #tpu.memory_space<vmem>>, vector<32x128xi8>
    %1 = arith.extsi %0 : vector<32x128xi8> to vector<32x128xi32>
    %c32_i32 = arith.constant 32 : i32
    %2 = vector.broadcast %c32_i32 : i32 to vector<32x128xi32>
    %3 = arith.cmpi eq, %1, %2 : vector<32x128xi32>
    %c9_i32 = arith.constant 9 : i32
    %4 = vector.broadcast %c9_i32 : i32 to vector<32x128xi32>
    %5 = arith.cmpi eq, %1, %4 : vector<32x128xi32>
    %6 = arith.ori %3, %5 : vector<32x128xi1>
    %c10_i32 = arith.constant 10 : i32
    %7 = vector.broadcast %c10_i32 : i32 to vector<32x128xi32>
    %8 = arith.cmpi eq, %1, %7 : vector<32x128xi32>
    %9 = arith.ori %6, %8 : vector<32x128xi1>
    %c0_i32 = arith.constant 0 : i32
    %10 = vector.broadcast %c0_i32 : i32 to vector<32x128xi32>
    %11 = arith.cmpi eq, %1, %10 : vector<32x128xi32>
    %12 = arith.ori %9, %11 : vector<32x128xi1>
    %c44_i32 = arith.constant 44 : i32
    %13 = vector.broadcast %c44_i32 : i32 to vector<32x128xi32>
    %14 = arith.cmpi eq, %1, %13 : vector<32x128xi32>
    %15 = arith.ori %12, %14 : vector<32x128xi1>
    %c46_i32 = arith.constant 46 : i32
    %16 = vector.broadcast %c46_i32 : i32 to vector<32x128xi32>
    %17 = arith.cmpi eq, %1, %16 : vector<32x128xi32>
    %18 = arith.ori %15, %17 : vector<32x128xi1>
    %c33_i32 = arith.constant 33 : i32
    %19 = vector.broadcast %c33_i32 : i32 to vector<32x128xi32>
    %20 = arith.cmpi eq, %1, %19 : vector<32x128xi32>
    %21 = arith.ori %18, %20 : vector<32x128xi1>
    %c63_i32 = arith.constant 63 : i32
    %22 = vector.broadcast %c63_i32 : i32 to vector<32x128xi32>
    %23 = arith.cmpi eq, %1, %22 : vector<32x128xi32>
    %24 = arith.ori %21, %23 : vector<32x128xi1>
    %c32_i32_1 = arith.constant 32 : i32
    %25 = vector.broadcast %c32_i32_1 : i32 to vector<32x128xi32>
    %26 = arith.select %24, %25, %1 : vector<32x128xi1>, vector<32x128xi32>
    %27 = arith.trunci %26 : vector<32x128xi32> to vector<32x128xi8>
    %c0_2 = arith.constant 0 : index
    %c0_3 = arith.constant 0 : index
    %28 = vector.load %arg2[%c0_2, %c0_3] : memref<32x128xi8, #tpu.memory_space<vmem>>, vector<32x128xi8>
    tpu.vector_store %arg2[%c0_2, %c0_3], %27 {strides = array<i32>} : memref<32x128xi8, #tpu.memory_space<vmem>>, vector<32x128xi8>,
    %29 = tpu.iota {dimensions = array<i32: 1>} : vector<32x128xi32>
    %30 = arith.extui %24 : vector<32x128xi1> to vector<32x128xi32>
    %c1_i32 = arith.constant 1 : i32
    %31 = tpu.dynamic_rotate %30 by %c1_i32 dim 1 : vector<32x128xi32>, i32 -> vector<32x128xi32>
    %c1_i32_4 = arith.constant 1 : i32
    %32 = vector.broadcast %c1_i32_4 : i32 to vector<32x128xi32>
    %33 = arith.cmpi eq, %31, %32 : vector<32x128xi32>
    %c0_i32_5 = arith.constant 0 : i32
    %34 = vector.broadcast %c0_i32_5 : i32 to vector<32x128xi32>
    %35 = arith.cmpi eq, %29, %34 : vector<32x128xi32>
    %36 = arith.ori %33, %35 : vector<32x128xi1>
    %c1_i32_6 = arith.constant 1 : i32
    %c0_i32_7 = arith.constant 0 : i32
    %37 = vector.broadcast %c1_i32_6 : i32 to vector<32x128xi32>
    %38 = vector.broadcast %c0_i32_7 : i32 to vector<32x128xi32>
    %39 = arith.select %36, %37, %38 : vector<32x128xi1>, vector<32x128xi32>
    %c0_i32_8 = arith.constant 0 : i32
    %40 = vector.broadcast %c0_i32_8 : i32 to vector<32x128xi32>
    %41 = arith.select %24, %40, %39 : vector<32x128xi1>, vector<32x128xi32>
    %42 = arith.trunci %41 : vector<32x128xi32> to vector<32x128xi8>
    %c0_9 = arith.constant 0 : index
    %c0_10 = arith.constant 0 : index
    %43 = vector.load %arg3[%c0_9, %c0_10] : memref<32x128xi8, #tpu.memory_space<vmem>>, vector<32x128xi8>
    tpu.vector_store %arg3[%c0_9, %c0_10], %42 {strides = array<i32>} : memref<32x128xi8, #tpu.memory_space<vmem>>, vector<32x128xi8>,
    %c1_i32_11 = arith.constant 1 : i32
    %44 = tpu.dynamic_rotate %41 by %c1_i32_11 dim 1 : vector<32x128xi32>, i32 -> vector<32x128xi32>
    %c1_i32_12 = arith.constant 1 : i32
    %45 = vector.broadcast %c1_i32_12 : i32 to vector<32x128xi32>
    %46 = arith.cmpi sge, %29, %45 : vector<32x128xi32>
    %c0_i32_13 = arith.constant 0 : i32
    %47 = vector.broadcast %c0_i32_13 : i32 to vector<32x128xi32>
    %48 = arith.select %46, %44, %47 : vector<32x128xi1>, vector<32x128xi32>
    %49 = arith.addi %41, %48 : vector<32x128xi32>
    %c2_i32 = arith.constant 2 : i32
    %50 = tpu.dynamic_rotate %49 by %c2_i32 dim 1 : vector<32x128xi32>, i32 -> vector<32x128xi32>
    %c2_i32_14 = arith.constant 2 : i32
    %51 = vector.broadcast %c2_i32_14 : i32 to vector<32x128xi32>
    %52 = arith.cmpi sge, %29, %51 : vector<32x128xi32>
    %c0_i32_15 = arith.constant 0 : i32
    %53 = vector.broadcast %c0_i32_15 : i32 to vector<32x128xi32>
    %54 = arith.select %52, %50, %53 : vector<32x128xi1>, vector<32x128xi32>
    %55 = arith.addi %49, %54 : vector<32x128xi32>
    %c4_i32 = arith.constant 4 : i32
    %56 = tpu.dynamic_rotate %55 by %c4_i32 dim 1 : vector<32x128xi32>, i32 -> vector<32x128xi32>
    %c4_i32_16 = arith.constant 4 : i32
    %57 = vector.broadcast %c4_i32_16 : i32 to vector<32x128xi32>
    %58 = arith.cmpi sge, %29, %57 : vector<32x128xi32>
    %c0_i32_17 = arith.constant 0 : i32
    %59 = vector.broadcast %c0_i32_17 : i32 to vector<32x128xi32>
    %60 = arith.select %58, %56, %59 : vector<32x128xi1>, vector<32x128xi32>
    %61 = arith.addi %55, %60 : vector<32x128xi32>
    %c8_i32 = arith.constant 8 : i32
    %62 = tpu.dynamic_rotate %61 by %c8_i32 dim 1 : vector<32x128xi32>, i32 -> vector<32x128xi32>
    %c8_i32_18 = arith.constant 8 : i32
    %63 = vector.broadcast %c8_i32_18 : i32 to vector<32x128xi32>
    %64 = arith.cmpi sge, %29, %63 : vector<32x128xi32>
    %c0_i32_19 = arith.constant 0 : i32
    %65 = vector.broadcast %c0_i32_19 : i32 to vector<32x128xi32>
    %66 = arith.select %64, %62, %65 : vector<32x128xi1>, vector<32x128xi32>
    %67 = arith.addi %61, %66 : vector<32x128xi32>
    %c16_i32 = arith.constant 16 : i32
    %68 = tpu.dynamic_rotate %67 by %c16_i32 dim 1 : vector<32x128xi32>, i32 -> vector<32x128xi32>
    %c16_i32_20 = arith.constant 16 : i32
    %69 = vector.broadcast %c16_i32_20 : i32 to vector<32x128xi32>
    %70 = arith.cmpi sge, %29, %69 : vector<32x128xi32>
    %c0_i32_21 = arith.constant 0 : i32
    %71 = vector.broadcast %c0_i32_21 : i32 to vector<32x128xi32>
    %72 = arith.select %70, %68, %71 : vector<32x128xi1>, vector<32x128xi32>
    %73 = arith.addi %67, %72 : vector<32x128xi32>
    %c32_i32_22 = arith.constant 32 : i32
    %74 = tpu.dynamic_rotate %73 by %c32_i32_22 dim 1 : vector<32x128xi32>, i32 -> vector<32x128xi32>
    %c32_i32_23 = arith.constant 32 : i32
    %75 = vector.broadcast %c32_i32_23 : i32 to vector<32x128xi32>
    %76 = arith.cmpi sge, %29, %75 : vector<32x128xi32>
    %c0_i32_24 = arith.constant 0 : i32
    %77 = vector.broadcast %c0_i32_24 : i32 to vector<32x128xi32>
    %78 = arith.select %76, %74, %77 : vector<32x128xi1>, vector<32x128xi32>
    %79 = arith.addi %73, %78 : vector<32x128xi32>
    %c64_i32 = arith.constant 64 : i32
    %80 = tpu.dynamic_rotate %79 by %c64_i32 dim 1 : vector<32x128xi32>, i32 -> vector<32x128xi32>
    %c64_i32_25 = arith.constant 64 : i32
    %81 = vector.broadcast %c64_i32_25 : i32 to vector<32x128xi32>
    %82 = arith.cmpi sge, %29, %81 : vector<32x128xi32>
    %c0_i32_26 = arith.constant 0 : i32
    %83 = vector.broadcast %c0_i32_26 : i32 to vector<32x128xi32>
    %84 = arith.select %82, %80, %83 : vector<32x128xi1>, vector<32x128xi32>
    %85 = arith.addi %79, %84 : vector<32x128xi32>
    %c1_i32_27 = arith.constant 1 : i32
    %86 = vector.broadcast %c1_i32_27 : i32 to vector<32x128xi32>
    %87 = arith.subi %85, %86 : vector<32x128xi32>
    %c-1_i32 = arith.constant -1 : i32
    %88 = vector.broadcast %c-1_i32 : i32 to vector<32x128xi32>
    %89 = arith.select %24, %88, %87 : vector<32x128xi1>, vector<32x128xi32>
    %c0_28 = arith.constant 0 : index
    %c0_29 = arith.constant 0 : index
    %90 = vector.load %arg4[%c0_28, %c0_29] : memref<32x128xi32, #tpu.memory_space<vmem>>, vector<32x128xi32>
    tpu.vector_store %arg4[%c0_28, %c0_29], %89 {strides = array<i32>} : memref<32x128xi32, #tpu.memory_space<vmem>>, vector<32x128xi32>,
    return
  }
  func.func @transform_0(%arg0: i32) -> (i32, i32) {
    %c0_i32 = arith.constant 0 : i32
    %c0_i32_0 = arith.constant 0 : i32
    return %arg0, %c0_i32 : i32, i32
  }
  func.func @transform_1(%arg0: i32) -> (i32, i32) {
    %c0_i32 = arith.constant 0 : i32
    %c0_i32_0 = arith.constant 0 : i32
    return %arg0, %c0_i32 : i32, i32
  }
  func.func @transform_2(%arg0: i32) -> (i32, i32) {
    %c0_i32 = arith.constant 0 : i32
    %c0_i32_0 = arith.constant 0 : i32
    return %arg0, %c0_i32 : i32, i32
  }
  func.func @transform_3(%arg0: i32) -> (i32, i32) {
    %c0_i32 = arith.constant 0 : i32
    %c0_i32_0 = arith.constant 0 : i32
    return %arg0, %c0_i32 : i32, i32
  }
}

</mosaic_0001>

<bundles_post_ra>
// kernel: tpu_custom_call.1
= control target key start
LH: loop header
LB: loop body
LE: loop exit
PB: predicated region body
PF: predicated region fallthrough
CT: control target
= control target key end

     0   :  { %9 = vsyncpa [#allocation3], 0  ;;  %s1300_s0 = inlined_call_operand.hbm [shape: s8[64,128], index: 0, kind: input, shape index: {}]   ;;  %s1301_s1 = inlined_call_operand.hbm [shape: s8[64,128], index: 1, kind: output, shape index: {0}]   ;;  %s1302_s2 = inlined_call_operand.hbm [shape: s8[64,128], index: 2, kind: output, shape index: {1}]   ;;  %s1303_s3 = inlined_call_operand.hbm [shape: s32[64,128], index: 3, kind: output, shape index: {2}]  }
   0x1   :  { %11 = vsyncpa [#allocation3 + $0x1], 0 }
   0x2   :  { %12 = vsyncpa [#allocation4], 0 }
   0x3   :  { %14 = vsyncpa [#allocation4 + $0x1], 0 }
   0x4   :  { %15 = vsyncpa [#allocation7], 0 }
   0x5   :  { %17 = vsyncpa [#allocation7 + $0x1], 0  ;;  %s908_s12 = smov 0   ;;  %s910_s13 = smov 0  }
   0x6   :  { %s912_s14 = smov 0   ;;  %s914_s15 = smov 0  }
   0x7 LB: > { %s929_s16 = sadd.s32 4294967295, %s873_s15   ;;  %s628_s17 = sadd.s32 4294967294, %s873_s15   ;;  %s873_s15 = sphi %s914_s15, %s1336_s15   ;;  %s869_s14 = sphi %s912_s14, %s1335_s14   ;;  %s865_s13 = sphi %s910_s13, %s1334_s13   ;;  %s861_s12 = sphi %s908_s12, %s1333_s12  }
   0x8   : > { %s933_s18 = sadd.s32 1, %s873_s15   ;;  %s30_s19 = sadd.s32 1, %s869_s14 }
   0x9   : > { %s27_s20 = ssub.s32 %s873_s15, %s933_s18  ;;  %p37_p0 = scmp.ne.s32.totalorder %s869_s14, %s865_s13 }
   0xa   : > { %p28_p1 = scmp.eq.s32.totalorder %s27_s20, 0  ;;  %p38_p2 = scmp.eq.s32.totalorder %s873_s15, 0 }
   0xb   : > { %p43_p3 = scmp.ne.s32.totalorder %s865_s13, %s861_s12  ;;  %p44_p4 = scmp.eq.s32.totalorder %s929_s16, 0 }
   0xc   : > { %s945_s21 = scalar_select %p28_p1, %s869_s14, %s30_s19  }
   0xd   : > { %p947_p5 = por %p38_p2, %p37_p0  ;;  %p951_p6 = por %p44_p4, %p43_p3 }
   0xe   : > { %p67_p7 = scmp.eq.s32.totalorder %s929_s16, 1  ;;  %p73_p8 = scmp.eq.s32.totalorder %s628_s17, 1 }
   0xf   : > { %p674_p10 = scmp.lt.s32.totalorder %s873_s15, 2  ;;  %s145_s26 = sand.u32 1, %s869_s14  }
  0x10   : > { %p960_p11 = por %p67_p7, %p37_p0  ;;  %p964_p12 = por %p73_p8, %p43_p3 }
  0x11   : > { %s632_s27 = sshll.u32 %s873_s15, 7  ;;  %s631_s28 = sshll.u32 %s145_s26, 3 }
  0x12   : > { %s1313_s24 = scalar_select %p960_p11, 1, 0 }
  0x13   : > { %s1314_s25 = scalar_select %p964_p12, 1, 0 }
  0x14   : > { %s973_s4 = scalar_lea.hbm %s1300_s0, %s632_s27  ;;  %s149_s5 = scalar_lea.vmem [#allocation2], %s631_s28 }
  0x15   : > { %s156_s6 = sshll.u32 %s149_s5, 4  ;;  %p977_p13 = pnand %p674_p10, %p947_p5  ;;  %s981_s6 = int_to_ptr.vmem [resolvable:$true] %s156_s6 }
  0x16   : > { %s146_s8 = scalar_lea.sflag [#allocation3], %s145_s26  ;;  %s717_s9 = scalar_lea.hbm %s973_s4, 128 }
  0x17   : > { %p718_p2 = scmp.ne.s32.totalorder %s973_s4, %s717_s9  ;;  %p719_p3 = pneg %p977_p13 }
  0x18   : > { %s722_s19 = scalar_lea.hbm %s1300_s0, 256  ;;  %p723_p5 = scmp.lt.u32.totalorder %s973_s4, %s1300_s0 }
  0x19   : > { %p720_p4 = pnand %p719_p3, %p718_p2  ;;  %p724_p8 = scmp.lt.u32.totalorder %s722_s19, %s717_s9 }
  0x1a   : > { %p726_p9 = scmp.lt.u32.totalorder %s717_s9, %s973_s4 }
  0x1b   : > { %p721_p7 = pneg %p720_p4  ;;  %p725_p10 = por %p724_p8, %p723_p5 }
  0x1d   : > { %p727_p0 = por %p726_p9, %p725_p10 }
  0x1f   : > { %p728_p1 = pnand %p727_p0, %p721_p7 }
  0x21   : > { %731 = shalt.err (!%p728_p1)
}
  0x22   : > { %s732_s26 = scalar_lea.vmem %s981_s6, 128  ;;  %s875_s27 = smov [#allocation2]  }
  0x23   : > { %p733_p2 = scmp.ne.s32.totalorder %s981_s6, %s732_s26  ;;  %s737_s28 = sshll.u32 %s875_s27, 4  ;;  %s738_s28 = int_to_ptr.vmem [resolvable:$false] %s737_s28 }
  0x24   : > { %s739_s29 = scalar_lea.vmem %s738_s28, 256  ;;  %p740_p11 = scmp.lt.s32.totalorder %s981_s6, %s738_s28 }
  0x25   : > { %p735_p4 = pnand %p733_p2, %p719_p3  ;;  %p741_p5 = scmp.lt.s32.totalorder %s739_s29, %s732_s26 }
  0x27   : > { %p736_p12 = pneg %p735_p4  ;;  %p742_p8 = por %p741_p5, %p740_p11 }
  0x29   : > { %p743_p9 = pnand %p742_p8, %p736_p12 }
  0x2b   : > { %746 = shalt.err (!%p743_p9)
}
  0x2c   : > { %663 = dma.hbm_to_vmem [thread:$0]  (!%p977_p13), %s973_s4, 128, %s981_s6, %s146_s8  }
  0x2d   : > { %p1316_p0 = scmp.lt.s32.totalorder %s873_s15, 3  ;;  %p1317_p1 = scmp.ge.s32.totalorder %s873_s15, 1 }
  0x2f   : > { %p162_p3 = pnand %p1317_p1, %p1316_p0 }
  0x30   : > { %s1015_s30 = sand.u32 (!%p162_p3), 1, %s865_s13  }
  0x31   : > { %165 = sbr.rel (%p162_p3) target bundleno = 1088 (0x440), region = 24  ;;  %s1018_s5 = sshll.u32 (!%p162_p3), %s1015_s30, 3 }
  0x32   : > { %s168_s9 = scalar_lea.sflag (!%p162_p3), [#allocation3], %s1015_s30  ;;  %s171_s7 = scalar_lea.vmem (!%p162_p3), [#allocation2], %s1018_s5 }
  0x38   : > { %848 = dma.done.wait (%p951_p6), %s168_s9, 128  }
  0x39   : > { %850 = vsyncadd (%p951_p6), %s168_s9, 4294967168  ;;  %v205_v0 = vld [vmem:[%s171_s7] sm:$0xff]  ;;  %v1318_v3 = vmov 0  ;;  %v876_v4 = vmov 0   ;;  %s877_s23 = smov 1   ;;  %v1320_v7 = vmov 0  ;;  %v278_v20 = vlaneseq }
  0x3a   : > { %v1026_v1 = vunpack.c.2.s8 %v205_v0  ;;  %v1033_v2 = vunpack.c.0.s8 %v205_v0  ;;  %v209_v6 = vunpack.c.3.s8 %v205_v0  ;;  %v207_v9 = vunpack.c.1.s8 %v205_v0  ;;  %s196_s4 = scalar_lea.vmem [#allocation6], %s1018_s5  ;;  %s878_s6 = smov 2  }
  0x3b   : > { %v1323_v11 = vmov 0  ;;  %v1092_v21 = vand.u32 127, %v278_v20  ;;  %s879_s8 = smov 4   ;;  %s880_s10 = smov 8  }
  0x3c   : > { %vm212_vm0 = vcmp.eq.s32.totalorder %v1026_v1, 32  ;;  %vm216_vm1 = vcmp.eq.s32.totalorder %v1026_v1, 9  ;;  %vm224_vm2 = vcmp.eq.s32.totalorder %v1026_v1, 10  ;;  %vm232_vm3 = vcmp.eq.s32.totalorder %v1026_v1, 0  ;;  %s881_s11 = smov 16   ;;  %s882_s19 = smov 32  }
  0x3d   : > { %vm220_vm4 = vmor %vm212_vm0, %vm216_vm1  ;;  %vm240_vm5 = vcmp.eq.s32.totalorder %v1026_v1, 44  ;;  %vm248_vm7 = vcmp.eq.s32.totalorder %v1026_v1, 46  ;;  %vm256_vm9 = vcmp.eq.s32.totalorder %v1026_v1, 33  ;;  %vm264_vm11 = vcmp.eq.s32.totalorder %v1026_v1, 63  ;;  %s883_s20 = smov 64   ;;  %s449_s22 = sand.u32 1, %s929_s16  }
  0x3e   : > { %vm228_vm6 = vmor %vm220_vm4, %vm224_vm2  ;;  %vm210_vm13 = vcmp.eq.s32.totalorder %v1033_v2, 32  ;;  %vm214_vm14 = vcmp.eq.s32.totalorder %v1033_v2, 9  ;;  %vm222_vm0 = vcmp.eq.s32.totalorder %v1033_v2, 10  ;;  %vm230_vm2 = vcmp.eq.s32.totalorder %v1033_v2, 0  ;;  %s645_s26 = sshll.u32 %s929_s16, 7  ;;  %s481_s9 = sshll.u32 %s196_s4, 4  ;;  %s1161_s9 = int_to_ptr.vmem [resolvable:$true] %s481_s9 }
  0x3f   : > { %vm236_vm8 = vmor %vm228_vm6, %vm232_vm3  ;;  %vm238_vm4 = vcmp.eq.s32.totalorder %v1033_v2, 44  ;;  %vm246_vm6 = vcmp.eq.s32.totalorder %v1033_v2, 46  ;;  %s1153_s29 = scalar_lea.hbm %s1302_s2, %s645_s26  ;;  %s189_s7 = scalar_lea.vmem [#allocation5], %s1018_s5 }
  0x40   : > { %vm244_vm10 = vmor %vm236_vm8, %vm240_vm5  ;;  %vm254_vm8 = vcmp.eq.s32.totalorder %v1033_v2, 33  ;;  %p1330_p11 = scmp.ne.s32.totalorder %s1313_s24, 0 }
  0x41   : > { %vm252_vm12 = vmor %vm244_vm10, %vm248_vm7  ;;  %vm262_vm10 = vcmp.eq.s32.totalorder %v1033_v2, 63 }
  0x42   : > { %vm260_vm15 = vmor %vm252_vm12, %vm256_vm9  ;;  %vm213_vm12 = vcmp.eq.s32.totalorder %v209_v6, 32 }
  0x43   : > { %vm1041_vm1 = vmor %vm260_vm15, %vm264_vm11  ;;  %vm217_vm15 = vcmp.eq.s32.totalorder %v209_v6, 9 }
  0x44   : > { %v1319_v3 = vsel %vm1041_vm1, 4294967295, %v1318_v3  ;;  %v282_v5 = vsel %vm1041_vm1, 1, %v876_v4  ;;  %vm218_vm3 = vmor %vm210_vm13, %vm214_vm14  ;;  %vm225_vm13 = vcmp.eq.s32.totalorder %v209_v6, 10 }
  0x45   : > { %288 = vrot.lane.b32.xlu1 %v282_v5, %s877_s23  ;;  %vm226_vm5 = vmor %vm218_vm3, %vm222_vm0  ;;  %vm233_vm0 = vcmp.eq.s32.totalorder %v209_v6, 0  ;;  %vm241_vm3 = vcmp.eq.s32.totalorder %v209_v6, 44 }
  0x46   : > { %vm234_vm7 = vmor %vm226_vm5, %vm230_vm2  ;;  %vm249_vm5 = vcmp.eq.s32.totalorder %v209_v6, 46 }
  0x47   : > { %vm242_vm9 = vmor %vm234_vm7, %vm238_vm4  ;;  %vm257_vm7 = vcmp.eq.s32.totalorder %v209_v6, 33 }
  0x48   : > { %vm250_vm11 = vmor %vm242_vm9, %vm246_vm6  ;;  %vm265_vm9 = vcmp.eq.s32.totalorder %v209_v6, 63 }
  0x49   : > { %vm258_vm1 = vmor %vm250_vm11, %vm254_vm8  ;;  %vm215_vm11 = vcmp.eq.s32.totalorder %v207_v9, 9 }
  0x4a   : > { %vm1054_vm14 = vmor %vm258_vm1, %vm262_vm10  ;;  %vm211_vm10 = vcmp.eq.s32.totalorder %v207_v9, 32 }
  0x4b   : > { %v1321_v7 = vsel %vm1054_vm14, 4294967295, %v1320_v7  ;;  %v280_v8 = vsel %vm1054_vm14, 1, %v876_v4  ;;  %vm221_vm2 = vmor %vm213_vm12, %vm217_vm15  ;;  %vm1322_vm14 = vnez %v1319_v3  ;;  %vm223_vm15 = vcmp.eq.s32.totalorder %v207_v9, 10 }
  0x4c   : > { %284 = vrot.lane.b32.xlu0 %v280_v8, %s877_s23  ;;  %vm229_vm4 = vmor %vm221_vm2, %vm225_vm13  ;;  %v272_v10 = vsel %vm1322_vm14, 32, %v1026_v1  ;;  %vm231_vm13 = vcmp.eq.s32.totalorder %v207_v9, 0 }
  0x4d   : > { %vm237_vm6 = vmor %vm229_vm4, %vm233_vm0 }
  0x4e   : > { %vm245_vm8 = vmor %vm237_vm6, %vm241_vm3  ;;  %vm239_vm3 = vcmp.eq.s32.totalorder %v207_v9, 44 }
  0x4f   : > { %vm253_vm1 = vmor %vm245_vm8, %vm249_vm5  ;;  %vm247_vm5 = vcmp.eq.s32.totalorder %v207_v9, 46 }
  0x50   : > { %vm261_vm12 = vmor %vm253_vm1, %vm257_vm7  ;;  %vm255_vm7 = vcmp.eq.s32.totalorder %v207_v9, 33 }
  0x51   : > { %vm1065_vm2 = vmor %vm261_vm12, %vm265_vm9  ;;  %vm263_vm9 = vcmp.eq.s32.totalorder %v207_v9, 63  ;;  %vm1325_vm12 = vnez %v1321_v7 }
  0x52   : > { %v1324_v11 = vsel %vm1065_vm2, 4294967295, %v1323_v11  ;;  %v273_v12 = vsel %vm1065_vm2, 32, %v209_v6  ;;  %v283_v13 = vsel %vm1065_vm2, 1, %v876_v4  ;;  %vm219_vm0 = vmor %vm211_vm10, %vm215_vm11  ;;  %v270_v15 = vsel %vm1325_vm12, 32, %v1033_v2 }
  0x53   : > { %290 = vrot.lane.b32.xlu1 %v283_v13, %s877_s23  ;;  %v1075_v14 = vpack.c.b16 %v273_v12, %v272_v10  ;;  %vm227_vm4 = vmor %vm219_vm0, %vm223_vm15  ;;  %vm1328_vm0 = vnez %v1319_v3 }
  0x54   : > { %vm235_vm6 = vmor %vm227_vm4, %vm231_vm13 }
  0x55   : > { %vm243_vm8 = vmor %vm235_vm6, %vm239_vm3 }
  0x56   : > { %vm251_vm1 = vmor %vm243_vm8, %vm247_vm5  ;;  %vm1329_vm5 = vnez %v1324_v11  ;;  %vm321_vm8 = vcmp.ge.s32.totalorder %v1092_v21, 1 }
  0x57   : > { %vm259_vm14 = vmor %vm251_vm1, %vm255_vm7  ;;  %vm355_vm1 = vcmp.ge.s32.totalorder %v1092_v21, 4 }
  0x58   : > { %vm1080_vm2 = vmor %vm259_vm14, %vm263_vm9  ;;  %vm296_vm14 = vcmp.eq.s32.totalorder %v1092_v21, 0  ;;  %vm338_vm9 = vcmp.ge.s32.totalorder %v1092_v21, 2 }
  0x59   : > { %v271_v17 = vsel %vm1080_vm2, 32, %v207_v9  ;;  %v281_v18 = vsel %vm1080_vm2, 1, %v876_v4 }
  0x5a   : > { %286 = vrot.lane.b32.xlu0 %v281_v18, %s877_s23  ;;  %v1090_v19 = vpack.c.b16 %v271_v17, %v270_v15 }
  0xb7   : > { %v289_v22 = vpop.permute.xlu1 %288 }
  0xb8   : > { %vm294_vm10 = vcmp.eq.s32.totalorder %v289_v22, 1 }
  0xb9   : > { %vm299_vm11 = vmor %vm294_vm10, %vm296_vm14  ;;  %vm372_vm10 = vcmp.ge.s32.totalorder %v1092_v21, 8 }
  0xba   : > { %v303_v24 = vsel %vm299_vm11, 1, %v876_v4  ;;  %vm406_vm11 = vcmp.ge.s32.totalorder %v1092_v21, 32 }
  0xbb   : > { %v307_v27 = vsel %vm1328_vm0, 0, %v303_v24 }
  0xbe   : > { %v285_v23 = vpop.permute.xlu0 %284 }
  0xbf   : > { %vm292_vm15 = vcmp.eq.s32.totalorder %v285_v23, 1 }
  0xc0   : > { %vm297_vm13 = vmor %vm292_vm15, %vm296_vm14 }
  0xc1   : > { %v301_v25 = vsel %vm297_vm13, 1, %v876_v4 }
  0xc2   : > { %v305_v26 = vsel %vm1325_vm12, 0, %v301_v25 }
  0xc3   : > { %313 = vrot.lane.b32.xlu0 %v305_v26, %s877_s23 }
  0xc5   : > { %v291_v28 = vpop.permute.xlu1 %290 }
  0xc6   : > { %vm295_vm3 = vcmp.eq.s32.totalorder %v291_v28, 1 }
  0xc7   : > { %vm300_vm4 = vmor %vm295_vm3, %vm296_vm14  ;;  %317 = vrot.lane.b32.xlu0 %v307_v27, %s877_s23 }
  0xc8   : > { %v304_v29 = vsel %vm300_vm4, 1, %v876_v4 }
  0xc9   : > { %v308_v31 = vsel %vm1329_vm5, 0, %v304_v29 }
  0xca   : > { %v310_v33 = vpack.c.b16 %v308_v31, %v307_v27 }
  0xcc   : > { %v287_v30 = vpop.permute.xlu0 %286 }
  0xcd   : > { %vm293_vm6 = vcmp.eq.s32.totalorder %v287_v30, 1 }
  0xce   : > { %vm298_vm7 = vmor %vm293_vm6, %vm296_vm14  ;;  %vm389_vm14 = vcmp.ge.s32.totalorder %v1092_v21, 16 }
  0xcf   : > { %v302_v32 = vsel %vm298_vm7, 1, %v876_v4 }
  0xd0   : > { %v306_v34 = vsel %vm1080_vm2, 0, %v302_v32 }
  0xd1   : > { %315 = vrot.lane.b32.xlu1 %v306_v34, %s877_s23  ;;  %v309_v35 = vpack.c.b16 %v306_v34, %v305_v26 }
  0xd3   : > { %v311_v36 = vpack.c.b8 %v310_v33, %v309_v35 }
  0xd5   : > { %319 = vrot.lane.b32.xlu1 %v308_v31, %s877_s23  ;;  %312 = vst [vmem:[%s196_s4] sm:$0xff] %v311_v36  ;;  %s1166_s23 = scalar_lea.sflag [#allocation7], %s449_s22 }
 0x135   : > { %v314_v37 = vpop.permute.xlu0 %313 }
 0x136   : > { %v322_v38 = vsel %vm321_vm8, %v314_v37, 0 }
 0x137   : > { %v326_v39 = vadd.s32 %v322_v38, %v305_v26 }
 0x139   : > { %330 = vrot.lane.b32.xlu0 %v326_v39, %s878_s6  ;;  %v318_v40 = vpop.permute.xlu0 %317 }
 0x13a   : > { %v324_v41 = vsel %vm321_vm8, %v318_v40, 0 }
 0x13b   : > { %v328_v42 = vadd.s32 %v324_v41, %v307_v27 }
 0x13d   : > { %334 = vrot.lane.b32.xlu0 %v328_v42, %s878_s6 }
 0x143   : > { %v316_v43 = vpop.permute.xlu1 %315 }
 0x144   : > { %v323_v44 = vsel %vm321_vm8, %v316_v43, 0 }
 0x145   : > { %v327_v45 = vadd.s32 %v323_v44, %v306_v34 }
 0x147   : > { %332 = vrot.lane.b32.xlu1 %v327_v45, %s878_s6  ;;  %v320_v46 = vpop.permute.xlu1 %319 }
 0x148   : > { %v325_v47 = vsel %vm321_vm8, %v320_v46, 0  ;;  %v276_v46 = vpack.c.b8 %v1075_v14, %v1090_v19 }
 0x149   : > { %v329_v48 = vadd.s32 %v325_v47, %v308_v31 }
 0x14a   : > { %277 = vst [vmem:[%s189_s7] sm:$0xff] %v276_v46 }
 0x14b   : > { %336 = vrot.lane.b32.xlu1 %v329_v48, %s878_s6  ;;  %s747_s6 = scalar_lea.vmem %s1161_s9, 128 }
 0x14c   : > { %p748_p6 = scmp.ne.s32.totalorder %s1161_s9, %s747_s6 }
 0x14e   : > { %p749_p12 = pnand %p748_p6, %p1330_p11 }
 0x150   : > { %p750_p13 = pneg %p749_p12 }
 0x1ab   : > { %v331_v49 = vpop.permute.xlu0 %330 }
 0x1ac   : > { %v339_v50 = vsel %vm338_vm9, %v331_v49, 0 }
 0x1ad   : > { %v343_v51 = vadd.s32 %v339_v50, %v326_v39 }
 0x1af   : > { %347 = vrot.lane.b32.xlu0 %v343_v51, %s879_s8  ;;  %v335_v52 = vpop.permute.xlu0 %334 }
 0x1b0   : > { %v341_v53 = vsel %vm338_vm9, %v335_v52, 0 }
 0x1b1   : > { %v345_v54 = vadd.s32 %v341_v53, %v328_v42 }
 0x1b3   : > { %351 = vrot.lane.b32.xlu0 %v345_v54, %s879_s8 }
 0x1b9   : > { %v333_v55 = vpop.permute.xlu1 %332 }
 0x1ba   : > { %v340_v56 = vsel %vm338_vm9, %v333_v55, 0 }
 0x1bb   : > { %v344_v57 = vadd.s32 %v340_v56, %v327_v45 }
 0x1bd   : > { %349 = vrot.lane.b32.xlu1 %v344_v57, %s879_s8  ;;  %v337_v58 = vpop.permute.xlu1 %336 }
 0x1be   : > { %v342_v59 = vsel %vm338_vm9, %v337_v58, 0 }
 0x1bf   : > { %v346_v60 = vadd.s32 %v342_v59, %v329_v48 }
 0x1c1   : > { %353 = vrot.lane.b32.xlu1 %v346_v60, %s879_s8  ;;  %s884_s8 = smov [#allocation6]  }
 0x221   : > { %v348_v61 = vpop.permute.xlu0 %347 }
 0x222   : > { %v356_v62 = vsel %vm355_vm1, %v348_v61, 0 }
 0x223   : > { %v360_v63 = vadd.s32 %v356_v62, %v343_v51 }
 0x225   : > { %364 = vrot.lane.b32.xlu0 %v360_v63, %s880_s10  ;;  %v352_v0 = vpop.permute.xlu0 %351 }
 0x226   : > { %v358_v1 = vsel %vm355_vm1, %v352_v0, 0 }
 0x227   : > { %v362_v2 = vadd.s32 %v358_v1, %v345_v54 }
 0x229   : > { %368 = vrot.lane.b32.xlu0 %v362_v2, %s880_s10 }
 0x22f   : > { %v350_v4 = vpop.permute.xlu1 %349 }
 0x230   : > { %v357_v5 = vsel %vm355_vm1, %v350_v4, 0 }
 0x231   : > { %v361_v6 = vadd.s32 %v357_v5, %v344_v57 }
 0x233   : > { %366 = vrot.lane.b32.xlu1 %v361_v6, %s880_s10  ;;  %v354_v8 = vpop.permute.xlu1 %353 }
 0x234   : > { %v359_v9 = vsel %vm355_vm1, %v354_v8, 0 }
 0x235   : > { %v363_v10 = vadd.s32 %v359_v9, %v346_v60 }
 0x237   : > { %370 = vrot.lane.b32.xlu1 %v363_v10, %s880_s10 }
 0x297   : > { %v365_v12 = vpop.permute.xlu0 %364 }
 0x298   : > { %v373_v13 = vsel %vm372_vm10, %v365_v12, 0 }
 0x299   : > { %v377_v15 = vadd.s32 %v373_v13, %v360_v63 }
 0x29b   : > { %381 = vrot.lane.b32.xlu0 %v377_v15, %s881_s11  ;;  %v369_v17 = vpop.permute.xlu0 %368 }
 0x29c   : > { %v375_v18 = vsel %vm372_vm10, %v369_v17, 0 }
 0x29d   : > { %v379_v20 = vadd.s32 %v375_v18, %v362_v2 }
 0x29f   : > { %385 = vrot.lane.b32.xlu0 %v379_v20, %s881_s11 }
 0x2a5   : > { %v367_v22 = vpop.permute.xlu1 %366 }
 0x2a6   : > { %v374_v23 = vsel %vm372_vm10, %v367_v22, 0 }
 0x2a7   : > { %v378_v24 = vadd.s32 %v374_v23, %v361_v6 }
 0x2a9   : > { %383 = vrot.lane.b32.xlu1 %v378_v24, %s881_s11  ;;  %v371_v25 = vpop.permute.xlu1 %370 }
 0x2aa   : > { %v376_v26 = vsel %vm372_vm10, %v371_v25, 0 }
 0x2ab   : > { %v380_v27 = vadd.s32 %v376_v26, %v363_v10 }
 0x2ad   : > { %387 = vrot.lane.b32.xlu1 %v380_v27, %s881_s11  ;;  %s751_s11 = sshll.u32 %s884_s8, 4  ;;  %s752_s11 = int_to_ptr.vmem [resolvable:$false] %s751_s11 }
 0x2ae   : > { %s753_s4 = scalar_lea.vmem %s752_s11, 256  ;;  %p754_p7 = scmp.lt.s32.totalorder %s1161_s9, %s752_s11 }
 0x2af   : > { %p755_p10 = scmp.lt.s32.totalorder %s753_s4, %s747_s6 }
 0x2b1   : > { %p756_p2 = por %p755_p10, %p754_p7 }
 0x2b3   : > { %p757_p4 = pnand %p756_p2, %p750_p13 }
 0x30d   : > { %v382_v28 = vpop.permute.xlu0 %381 }
 0x30e   : > { %v390_v29 = vsel %vm389_vm14, %v382_v28, 0 }
 0x30f   : > { %v394_v30 = vadd.s32 %v390_v29, %v377_v15 }
 0x311   : > { %398 = vrot.lane.b32.xlu0 %v394_v30, %s882_s19  ;;  %v386_v31 = vpop.permute.xlu0 %385 }
 0x312   : > { %v392_v32 = vsel %vm389_vm14, %v386_v31, 0 }
 0x313   : > { %v396_v33 = vadd.s32 %v392_v32, %v379_v20 }
 0x315   : > { %402 = vrot.lane.b32.xlu0 %v396_v33, %s882_s19 }
 0x31b   : > { %v384_v34 = vpop.permute.xlu1 %383 }
 0x31c   : > { %v391_v35 = vsel %vm389_vm14, %v384_v34, 0 }
 0x31d   : > { %v395_v36 = vadd.s32 %v391_v35, %v378_v24 }
 0x31f   : > { %400 = vrot.lane.b32.xlu1 %v395_v36, %s882_s19  ;;  %v388_v37 = vpop.permute.xlu1 %387 }
 0x320   : > { %v393_v38 = vsel %vm389_vm14, %v388_v37, 0 }
 0x321   : > { %v397_v39 = vadd.s32 %v393_v38, %v380_v27 }
 0x323   : > { %404 = vrot.lane.b32.xlu1 %v397_v39, %s882_s19 }
 0x383   : > { %v399_v40 = vpop.permute.xlu0 %398 }
 0x384   : > { %v407_v41 = vsel %vm406_vm11, %v399_v40, 0 }
 0x385   : > { %v1134_v42 = vadd.s32 %v407_v41, %v394_v30 }
 0x387   : > { %415 = vrot.lane.b32.xlu0 %v1134_v42, %s883_s20  ;;  %v403_v43 = vpop.permute.xlu0 %402 }
 0x388   : > { %v409_v44 = vsel %vm406_vm11, %v403_v43, 0 }
 0x389   : > { %v1140_v45 = vadd.s32 %v409_v44, %v396_v33 }
 0x38b   : > { %419 = vrot.lane.b32.xlu0 %v1140_v45, %s883_s20 }
 0x391   : > { %v401_v47 = vpop.permute.xlu1 %400 }
 0x392   : > { %v408_v48 = vsel %vm406_vm11, %v401_v47, 0 }
 0x393   : > { %v1159_v49 = vadd.s32 %v408_v48, %v395_v36 }
 0x394   : > { %760 = shalt.err (!%p757_p4)
}
 0x395   : > { %s761_s19 = scalar_lea.hbm %s1153_s29, 128  ;;  %s765_s28 = scalar_lea.hbm %s1302_s2, 256 }
 0x396   : > { %p762_p5 = scmp.ne.s32.totalorder %s1153_s29, %s761_s19  ;;  %p766_p0 = scmp.lt.u32.totalorder %s1153_s29, %s1302_s2 }
 0x397   : > { %p767_p1 = scmp.lt.u32.totalorder %s765_s28, %s761_s19  ;;  %p769_p6 = scmp.lt.u32.totalorder %s761_s19, %s1153_s29 }
 0x398   : > { %p763_p8 = pnand %p762_p5, %p1330_p11 }
 0x399   : > { %p768_p3 = por %p767_p1, %p766_p0 }
 0x39a   : > { %p764_p9 = pneg %p763_p8 }
 0x39b   : > { %p770_p12 = por %p769_p6, %p768_p3 }
 0x39d   : > { %p771_p13 = pnand %p770_p12, %p764_p9 }
 0x39f   : > { %774 = shalt.err (!%p771_p13)
}
 0x3a0   : > { %655 = dma.vmem_to_hbm [thread:$0]  (%p1330_p11), %s1161_s9, 128, %s1153_s29, %s1166_s23   ;;  %417 = vrot.lane.b32.xlu1 %v1159_v49, %s883_s20  ;;  %v405_v14 = vpop.permute.xlu1 %404 }
 0x3a1   : > { %s1197_s19 = scalar_lea.hbm %s1301_s1, %s645_s26  ;;  %s468_s22 = sshll.u32 %s189_s7, 4  ;;  %v410_v19 = vsel %vm406_vm11, %v405_v14, 0  ;;  %s1203_s22 = int_to_ptr.vmem [resolvable:$true] %s468_s22 }
 0x3a2   : > { %v414_v50 = vadd.s32 %v410_v19, %v397_v39  ;;  %s445_s29 = scalar_lea.sflag [#allocation4], %s1015_s30  ;;  %s775_s9 = scalar_lea.vmem %s1203_s22, 128 }
 0x3a3   : > { %p776_p7 = scmp.ne.s32.totalorder %s1203_s22, %s775_s9  ;;  %s885_s27 = smov [#allocation5]  }
 0x3a4   : > { %s779_s26 = sshll.u32 %s885_s27, 4  ;;  %s780_s26 = int_to_ptr.vmem [resolvable:$false] %s779_s26 }
 0x3a5   : > { %p777_p10 = pnand %p776_p7, %p1330_p11  ;;  %s781_s5 = scalar_lea.vmem %s780_s26, 256 }
 0x3a6   : > { %p782_p4 = scmp.lt.s32.totalorder %s1203_s22, %s780_s26  ;;  %p783_p5 = scmp.lt.s32.totalorder %s781_s5, %s775_s9 }
 0x3a7   : > { %p778_p2 = pneg %p777_p10 }
 0x3a8   : > { %p784_p8 = por %p783_p5, %p782_p4 }
 0x3aa   : > { %p785_p9 = pnand %p784_p8, %p778_p2 }
 0x3ac   : > { %788 = shalt.err (!%p785_p9)
}
 0x3ad   : > { %s789_s7 = scalar_lea.hbm %s1197_s19, 128  ;;  %s793_s11 = scalar_lea.hbm %s1301_s1, 256 }
 0x3ae   : > { %p790_p0 = scmp.ne.s32.totalorder %s1197_s19, %s789_s7  ;;  %p794_p6 = scmp.lt.u32.totalorder %s1197_s19, %s1301_s1 }
 0x3af   : > { %p795_p12 = scmp.lt.u32.totalorder %s793_s11, %s789_s7  ;;  %p797_p7 = scmp.lt.u32.totalorder %s789_s7, %s1197_s19 }
 0x3b0   : > { %p791_p1 = pnand %p790_p0, %p1330_p11 }
 0x3b1   : > { %p796_p13 = por %p795_p12, %p794_p6 }
 0x3b2   : > { %p792_p3 = pneg %p791_p1 }
 0x3b3   : > { %p798_p10 = por %p797_p7, %p796_p13 }
 0x3b5   : > { %p799_p2 = pnand %p798_p10, %p792_p3 }
 0x3b7   : > { %802 = shalt.err (!%p799_p2)
}
 0x3b8   : > { %654 = dma.vmem_to_hbm [thread:$0]  (%p1330_p11), %s1203_s22, 128, %s1197_s19, %s445_s29   ;;  %421 = vrot.lane.b32.xlu1 %v414_v50, %s883_s20  ;;  %vm423_vm15 = vcmp.ge.s32.totalorder %v1092_v21, 64 }
 0x3b9   : > { %s637_s9 = sshll.u32 %s1015_s30, 5  ;;  %s651_s19 = sshll.u32 %s929_s16, 9 }
 0x3ba   : > { %s203_s20 = scalar_lea.vmem [#allocation8], %s637_s9  ;;  %s1253_s27 = scalar_lea.hbm %s1303_s3, %s651_s19 }
 0x3bb   : > { %s494_s30 = sshll.u32 %s203_s20, 4  ;;  %s886_s16 = smov [#allocation8]   ;;  %s1248_s30 = int_to_ptr.vmem [resolvable:$true] %s494_s30 }
 0x3bc   : > { %s803_s26 = scalar_lea.vmem %s1248_s30, 512  ;;  %s807_s5 = sshll.u32 %s886_s16, 4  ;;  %s808_s5 = int_to_ptr.vmem [resolvable:$false] %s807_s5 }
 0x3bd   : > { %p804_p4 = scmp.ne.s32.totalorder %s1248_s30, %s803_s26  ;;  %s809_s7 = scalar_lea.vmem %s808_s5, 1024 }
 0x3be   : > { %p810_p9 = scmp.lt.s32.totalorder %s1248_s30, %s808_s5  ;;  %p811_p0 = scmp.lt.s32.totalorder %s809_s7, %s803_s26 }
 0x3bf   : > { %p805_p5 = pnand %p804_p4, %p1330_p11 }
 0x3c0   : > { %p812_p1 = por %p811_p0, %p810_p9 }
 0x3c1   : > { %p806_p8 = pneg %p805_p5 }
 0x3c3   : > { %p813_p3 = pnand %p812_p1, %p806_p8 }
 0x3f9   : > { %v416_v51 = vpop.permute.xlu0 %415 }
 0x3fa   : > { %v424_v52 = vsel %vm423_vm15, %v416_v51, 0 }
 0x3fb   : > { %v428_v53 = vadd.s32 %v424_v52, %v1134_v42 }
 0x3fd   : > { %v638_v54 = vadd.s32 4294967295, %v428_v53  ;;  %v420_v55 = vpop.permute.xlu0 %419 }
 0x3fe   : > { %v426_v56 = vsel %vm423_vm15, %v420_v55, 0 }
 0x3ff   : > { %v436_v57 = vsel %vm1325_vm12, 4294967295, %v638_v54  ;;  %v430_v58 = vadd.s32 %v426_v56, %v1140_v45 }
 0x400   : > { %440 = vst [vmem:[%s203_s20] sm:$0xff] %v436_v57 }
 0x401   : > { %v640_v59 = vadd.s32 4294967295, %v430_v58 }
 0x403   : > { %v438_v60 = vsel %vm1328_vm0, 4294967295, %v640_v59 }
 0x404   : > { %442 = vst [vmem:[%s203_s20 + $0x10] sm:$0xff] %v438_v60 }
 0x412   : > { %v418_v61 = vpop.permute.xlu1 %417 }
 0x413   : > { %v425_v62 = vsel %vm423_vm15, %v418_v61, 0 }
 0x414   : > { %v429_v63 = vadd.s32 %v425_v62, %v1159_v49 }
 0x416   : > { %v639_v0 = vadd.s32 4294967295, %v429_v63 }
 0x418   : > { %v437_v2 = vsel %vm1080_vm2, 4294967295, %v639_v0 }
 0x419   : > { %441 = vst [vmem:[%s203_s20 + $0x8] sm:$0xff] %v437_v2 }
 0x42a   : > { %v422_v7 = vpop.permute.xlu1 %421 }
 0x42b   : > { %v427_v1 = vsel %vm423_vm15, %v422_v7, 0 }
 0x42c   : > { %v431_v4 = vadd.s32 %v427_v1, %v414_v50 }
 0x42e   : > { %v641_v3 = vadd.s32 4294967295, %v431_v4 }
 0x430   : > { %v439_v21 = vsel %vm1329_vm5, 4294967295, %v641_v3 }
 0x431   : > { %443 = vst [vmem:[%s203_s20 + $0x18] sm:$0xff] %v439_v21 }
 0x432   : > { %816 = shalt.err (!%p813_p3)
}
 0x433   : > { %s817_s28 = scalar_lea.hbm %s1253_s27, 512  ;;  %s821_s6 = scalar_lea.hbm %s1303_s3, 1024 }
 0x434   : > { %p818_p6 = scmp.ne.s32.totalorder %s1253_s27, %s817_s28  ;;  %p822_p7 = scmp.lt.u32.totalorder %s1253_s27, %s1303_s3 }
 0x435   : > { %p823_p10 = scmp.lt.u32.totalorder %s821_s6, %s817_s28  ;;  %p825_p4 = scmp.lt.u32.totalorder %s817_s28, %s1253_s27 }
 0x436   : > { %p819_p12 = pnand %p818_p6, %p1330_p11 }
 0x437   : > { %p824_p2 = por %p823_p10, %p822_p7 }
 0x438   : > { %p820_p13 = pneg %p819_p12 }
 0x439   : > { %p826_p5 = por %p825_p4, %p824_p2 }
 0x43b   : > { %p827_p8 = pnand %p826_p5, %p820_p13 }
 0x43d   : > { %830 = shalt.err (!%p827_p8)
}
 0x43e   : > { %s887_s20 = smov 128  }
 0x43f   : > { %656 = dma.vmem_to_hbm [thread:$0]  (%p1330_p11), %s1248_s30, 512, %s1253_s27, %s1166_s23, %s887_s20, %s887_s20, %s880_s10  }
 0x440 PF: > { %s509_s19 = sand.u32 1, %s861_s12   ;;  %p1331_p9 = scmp.ne.s32.totalorder %s1314_s25, 0 }
 0x441   : > { %p1332_p0 = scmp.ge.s32.totalorder %s873_s15, 2  ;;  %s510_s22 = scalar_lea.sflag [#allocation4], %s509_s19 }
 0x443   : > { %p665_p1 = pnand %p1332_p0, %p1331_p9 }
 0x445   : > { %852 = dma.done.wait (!%p665_p1), %s510_s22, 128  }
 0x446   : > { %854 = vsyncadd (!%p665_p1), %s510_s22, 4294967168  ;;  %s518_s29 = sand.u32 1, %s628_s17  }
 0x447   : > { %s519_s24 = scalar_lea.sflag [#allocation7], %s518_s29 }
 0x448   : > { %856 = dma.done.wait (!%p665_p1), %s519_s24, 640  }
 0x449   : > { %858 = vsyncadd (!%p665_p1), %s519_s24, 4294966656  ;;  %p20_p11 = scmp.ge.s32.totalorder %s933_s18, 4   ;;  %s1333_s12 = smov %s865_s13 }
 0x44a   : > { %s1334_s13 = smov %s869_s14  ;;  %s1335_s14 = smov %s945_s21 }
 0x44b   : > { %s1336_s15 = smov %s933_s18  ;;  %22 = sbr.rel (!%p20_p11) target bundleno = 7 (0x7), region = 101 }
 0x452   :  { %533 = vsyncpa [#allocation3], 1 }
 0x453   :  { %535 = vsyncpa [#allocation3 + $0x1], 1 }
 0x454   :  { %536 = vsyncpa [#allocation4], 1 }
 0x455   :  { %538 = vsyncpa [#allocation4 + $0x1], 1 }
 0x456   :  { %539 = vsyncpa [#allocation7], 1 }
 0x457   :  { %541 = vsyncpa [#allocation7 + $0x1], 1 }

</bundles_post_ra>
